<compile_context>
chip_gen: v7x
topology: tpu7x:2x2x1
jax: 0.10.0
libtpu: 0.0.40
codegen_flags: <defaults>
</compile_context>

<pallas_src>
import functools
import math

import jax
import jax.numpy as jnp
from jax.experimental import pallas as pl
from jax.experimental.pallas import tpu as pltpu


def _conv_relu_kernel(mask_ref, x_ref, w_ref, o_ref, *, kh, kw, pad, H, W, Nb):
    """One grid step processes Nb images.

    mask_ref : (kh*kw, HW) f32   {0,1} boundary mask per tap (constant block, loaded once)
    x_ref    : (Nb, Cin, HW) f32 flattened input images (lane axis = H*W, lane-dense)
    w_ref    : (Cout, K) bf16    tight-packed im2col weights, K index = tap*Cin + cin
    o_ref    : (Nb, Cout, HW)    flattened output images (lane-dense stores)
    """
    HW = H * W

    per_image_patches = []
    for b in range(Nb):
        xb = x_ref[b]                                   # (Cin, HW) f32
        slabs = []
        for ky in range(kh):
            for kx in range(kw):
                dy = ky - pad
                dx = kx - pad
                s = dy * W + dx                         # flat-index shift of this tap
                shifted = xb if s == 0 else pltpu.roll(xb, shift=(-s) % HW, axis=1)
                if dy == 0 and dx == 0:
                    slab = shifted                      # center tap: mask is all ones
                else:
                    slab = shifted * mask_ref[pl.ds(ky * kw + kx, 1), :]   # f32 VPU math
                slabs.append(slab)
        # (K, HW) im2col columns for image b; single cast to bf16 for the MXU feed
        # (keep the masking math in f32 -- v5e has no bf16 VPU path).
        per_image_patches.append(jnp.concatenate(slabs, axis=0).astype(jnp.bfloat16))

    patch = (per_image_patches[0] if Nb == 1
             else jnp.concatenate(per_image_patches, axis=1))   # (K, Nb*HW) bf16

    # Single MXU matmul over the tight-packed contraction; f32 accumulate; ReLU.
    acc = jnp.dot(w_ref[...], patch, preferred_element_type=jnp.float32)  # (Cout, Nb*HW)
    acc = jnp.maximum(acc, 0.0)
    # TODO(synk): BatchNorm2d is skipped because BN_use = False in the reference module.
    for b in range(Nb):
        o_ref[b] = acc[:, b * HW:(b + 1) * HW].astype(o_ref.dtype)


def _pick_images_per_step(n):
    """Largest divisor of n, capped so the grid keeps >= 2 steps (v7x has 2 TensorCores)."""
    cap = max(1, min(8, n // 2))
    for nb in range(cap, 0, -1):
        if n % nb == 0:
            return nb
    return 1


def conv_bn_relu(x_nchw, weight_oihw, *, stride=1, padding=1):
    """Forward of ConvBNReLU. x: (N, Cin, H, W) NCHW, weight: (Cout, Cin, kh, kw). Returns NCHW."""
    N, Cin, H, W = x_nchw.shape
    Cout, Cin_w, kh, kw = weight_oihw.shape
    assert Cin == Cin_w
    # Fast path implemented for the module's 'same' geometry (ks=3, stride=1, pad=1 defaults).
    # TODO(synk): stride != 1 / non-'same' padding would need a strided-gather patch builder.
    assert stride == 1 and kh == kw and 2 * padding == kh - 1, (
        "Pallas ConvBNReLU kernel implements stride=1 'same' convolutions only")

    HW = H * W
    K = kh * kw * Cin                       # tight-packed contraction (no 8/128 padding)
    Nb = _pick_images_per_step(N)
    G = N // Nb

    # Free, contiguous reshape (no HBM transpose / pad round trip for activations).
    x_flat = x_nchw.reshape(N, Cin, HW)

    # Tight-packed im2col weights (Cout, K), K index = tap*Cin + cin; bf16 MXU feed.
    w2 = jnp.transpose(weight_oihw, (0, 2, 3, 1)).reshape(Cout, K).astype(jnp.bfloat16)

    # Per-tap {0,1} boundary masks, (kh*kw, HW) f32.  Constant index_map -> loaded once.
    p = jnp.arange(HW, dtype=jnp.int32)
    r = p // W
    c = p % W
    mask_rows = []
    for ky in range(kh):
        for kx in range(kw):
            dy, dx = ky - padding, kx - padding
            mask_rows.append(((r + dy >= 0) & (r + dy < H) &
                              (c + dx >= 0) & (c + dx < W)).astype(jnp.float32))
    masks = jnp.stack(mask_rows, axis=0)    # (kh*kw, HW)

    kernel = functools.partial(_conv_relu_kernel, kh=kh, kw=kw, pad=padding,
                               H=H, W=W, Nb=Nb)

    cost = pl.CostEstimate(
        flops=2 * N * Cout * HW * K,
        transcendentals=0,
        bytes_accessed=(N * Cin * HW * 4 + N * Cout * HW * 4
                        + Cout * K * 2 + kh * kw * HW * 4))

    out_flat = pl.pallas_call(
        kernel,
        out_shape=jax.ShapeDtypeStruct((N, Cout, HW), x_nchw.dtype),
        grid=(G,),
        in_specs=[
            pl.BlockSpec((kh * kw, HW), lambda n: (0, 0)),       # masks (loaded once)
            pl.BlockSpec((Nb, Cin, HW), lambda n: (n, 0, 0)),    # Nb input images
            pl.BlockSpec((Cout, K), lambda n: (0, 0)),           # weights (loaded once)
        ],
        out_specs=pl.BlockSpec((Nb, Cout, HW), lambda n: (n, 0, 0)),
        compiler_params=pltpu.CompilerParams(
            dimension_semantics=("parallel",)),
        cost_estimate=cost,
    )(masks, x_flat, w2)

    # Free reshape back to NCHW (output already channel-major).
    return out_flat.reshape(N, Cout, H, W)


def init_conv_weight(key, out_chan, in_chan, ks):
    """kaiming_normal_(a=1): gain = sqrt(2/(1+1^2)) = 1, std = gain / sqrt(fan_in)."""
    fan_in = in_chan * ks * ks
    std = 1.0 / math.sqrt(fan_in)
    return std * jax.random.normal(key, (out_chan, in_chan, ks, ks), dtype=jnp.float32)


def _reference(x, weight, stride, padding):
    ref = jax.lax.conv_general_dilated(
        x, weight, window_strides=(stride, stride),
        padding=((padding, padding), (padding, padding)),
        dimension_numbers=("NCHW", "OIHW", "NCHW"))
    return jnp.maximum(ref, 0.0)


if __name__ == "__main__":
    key = jax.random.PRNGKey(0)
    kx_key, kx2_key, kw_key = jax.random.split(key, 3)

    N, Cin, H, W = 2, 4, 16, 16
    Cout, ks, stride, padding = 8, 3, 1, 1

    x = jax.random.normal(kx_key, (N, Cin, H, W), dtype=jnp.float32)
    weight = init_conv_weight(kw_key, Cout, Cin, ks)

    out = jax.block_until_ready(conv_bn_relu(x, weight, stride=stride, padding=padding))
    ref = _reference(x, weight, stride, padding)
    assert out.shape == (N, Cout, H, W)
    # bf16 MXU operands with f32 accumulation -> loosened tolerance (per perf review note).
    assert jnp.allclose(out, ref, atol=5e-2, rtol=5e-2)

    # Also exercise the multi-image-per-step (batched grid) path.
    x2 = jax.random.normal(kx2_key, (8, Cin, H, W), dtype=jnp.float32)
    out2 = jax.block_until_ready(conv_bn_relu(x2, weight, stride=stride, padding=padding))
    ref2 = _reference(x2, weight, stride, padding)
    assert jnp.allclose(out2, ref2, atol=5e-2, rtol=5e-2)

    print("KERNEL_OK")
</pallas_src>

<mosaic_0001>
module attributes {stable_mosaic.version = 11 : i64} {
  func.func @_conv_relu_kernel(%arg0: i32, %arg1: memref<9x256xf32, #tpu.memory_space<vmem>>, %arg2: memref<1x4x256xf32, #tpu.memory_space<vmem>>, %arg3: memref<8x36xbf16, #tpu.memory_space<vmem>>, %arg4: memref<1x8x256xf32, #tpu.memory_space<vmem>>) attributes {dimension_semantics = [#tpu.dimension_semantics<parallel>], iteration_bounds = array<i64: 2>, scalar_prefetch = 0 : i64, scratch_operands = 0 : i64, tpu.core_type = #tpu.core_type<tc>, window_params = [{pipeline_mode = #tpu.pipeline_mode<synchronous>, transform_indices = @transform_0, window_bounds = array<i64: 9, 256>}, {transform_indices = @transform_1, window_bounds = array<i64: 1, 4, 256>}, {pipeline_mode = #tpu.pipeline_mode<synchronous>, transform_indices = @transform_2, window_bounds = array<i64: 8, 36>}, {transform_indices = @transform_3, window_bounds = array<i64: 1, 8, 256>}]} {
    %c0 = arith.constant 0 : index
    %c0_0 = arith.constant 0 : index
    %c0_1 = arith.constant 0 : index
    %0 = vector.load %arg2[%c0, %c0_0, %c0_1] : memref<1x4x256xf32, #tpu.memory_space<vmem>>, vector<1x4x256xf32>
    %1 = vector.shape_cast %0 : vector<1x4x256xf32> to vector<4x256xf32>
    %c17_i32 = arith.constant 17 : i32
    %2 = tpu.dynamic_rotate %1 by %c17_i32 dim 1 : vector<4x256xf32>, i32 -> vector<4x256xf32>
    %c0_2 = arith.constant 0 : index
    %c0_3 = arith.constant 0 : index
    %3 = vector.load %arg1[%c0_2, %c0_3] : memref<9x256xf32, #tpu.memory_space<vmem>>, vector<1x256xf32>
    %4 = vector.broadcast %3 : vector<1x256xf32> to vector<4x256xf32>
    %5 = arith.mulf %2, %4 : vector<4x256xf32>
    %c16_i32 = arith.constant 16 : i32
    %6 = tpu.dynamic_rotate %1 by %c16_i32 dim 1 : vector<4x256xf32>, i32 -> vector<4x256xf32>
    %c1 = arith.constant 1 : index
    %c0_4 = arith.constant 0 : index
    %7 = vector.load %arg1[%c1, %c0_4] : memref<9x256xf32, #tpu.memory_space<vmem>>, vector<1x256xf32>
    %8 = vector.broadcast %7 : vector<1x256xf32> to vector<4x256xf32>
    %9 = arith.mulf %6, %8 : vector<4x256xf32>
    %c15_i32 = arith.constant 15 : i32
    %10 = tpu.dynamic_rotate %1 by %c15_i32 dim 1 : vector<4x256xf32>, i32 -> vector<4x256xf32>
    %c2 = arith.constant 2 : index
    %c0_5 = arith.constant 0 : index
    %11 = vector.load %arg1[%c2, %c0_5] : memref<9x256xf32, #tpu.memory_space<vmem>>, vector<1x256xf32>
    %12 = vector.broadcast %11 : vector<1x256xf32> to vector<4x256xf32>
    %13 = arith.mulf %10, %12 : vector<4x256xf32>
    %c1_i32 = arith.constant 1 : i32
    %14 = tpu.dynamic_rotate %1 by %c1_i32 dim 1 : vector<4x256xf32>, i32 -> vector<4x256xf32>
    %c3 = arith.constant 3 : index
    %c0_6 = arith.constant 0 : index
    %15 = vector.load %arg1[%c3, %c0_6] : memref<9x256xf32, #tpu.memory_space<vmem>>, vector<1x256xf32>
    %16 = vector.broadcast %15 : vector<1x256xf32> to vector<4x256xf32>
    %17 = arith.mulf %14, %16 : vector<4x256xf32>
    %c255_i32 = arith.constant 255 : i32
    %18 = tpu.dynamic_rotate %1 by %c255_i32 dim 1 : vector<4x256xf32>, i32 -> vector<4x256xf32>
    %c5 = arith.constant 5 : index
    %c0_7 = arith.constant 0 : index
    %19 = vector.load %arg1[%c5, %c0_7] : memref<9x256xf32, #tpu.memory_space<vmem>>, vector<1x256xf32>
    %20 = vector.broadcast %19 : vector<1x256xf32> to vector<4x256xf32>
    %21 = arith.mulf %18, %20 : vector<4x256xf32>
    %c241_i32 = arith.constant 241 : i32
    %22 = tpu.dynamic_rotate %1 by %c241_i32 dim 1 : vector<4x256xf32>, i32 -> vector<4x256xf32>
    %c6 = arith.constant 6 : index
    %c0_8 = arith.constant 0 : index
    %23 = vector.load %arg1[%c6, %c0_8] : memref<9x256xf32, #tpu.memory_space<vmem>>, vector<1x256xf32>
    %24 = vector.broadcast %23 : vector<1x256xf32> to vector<4x256xf32>
    %25 = arith.mulf %22, %24 : vector<4x256xf32>
    %c240_i32 = arith.constant 240 : i32
    %26 = tpu.dynamic_rotate %1 by %c240_i32 dim 1 : vector<4x256xf32>, i32 -> vector<4x256xf32>
    %c7 = arith.constant 7 : index
    %c0_9 = arith.constant 0 : index
    %27 = vector.load %arg1[%c7, %c0_9] : memref<9x256xf32, #tpu.memory_space<vmem>>, vector<1x256xf32>
    %28 = vector.broadcast %27 : vector<1x256xf32> to vector<4x256xf32>
    %29 = arith.mulf %26, %28 : vector<4x256xf32>
    %c239_i32 = arith.constant 239 : i32
    %30 = tpu.dynamic_rotate %1 by %c239_i32 dim 1 : vector<4x256xf32>, i32 -> vector<4x256xf32>
    %c8 = arith.constant 8 : index
    %c0_10 = arith.constant 0 : index
    %31 = vector.load %arg1[%c8, %c0_10] : memref<9x256xf32, #tpu.memory_space<vmem>>, vector<1x256xf32>
    %32 = vector.broadcast %31 : vector<1x256xf32> to vector<4x256xf32>
    %33 = arith.mulf %30, %32 : vector<4x256xf32>
    %34 = tpu.concatenate %5, %9, %13, %17, %1, %21, %25, %29, %33 in 0 : vector<4x256xf32>, vector<4x256xf32>, vector<4x256xf32>, vector<4x256xf32>, vector<4x256xf32>, vector<4x256xf32>, vector<4x256xf32>, vector<4x256xf32>, vector<4x256xf32> -> vector<36x256xf32>
    %35 = arith.truncf %34 : vector<36x256xf32> to vector<36x256xbf16>
    %c0_11 = arith.constant 0 : index
    %c0_12 = arith.constant 0 : index
    %36 = vector.load %arg3[%c0_11, %c0_12] : memref<8x36xbf16, #tpu.memory_space<vmem>>, vector<8x36xbf16>
    %cst = arith.constant dense<0.000000e+00> : vector<8x256xf32>
    %37 = tpu.matmul %36, %35, %cst {dimension_numbers = #tpu.dot_dimension_numbers<[1], [0], [0], [1], [0, 0, 1, 1], [], []>} : vector<8x36xbf16>, vector<36x256xbf16>, vector<8x256xf32> -> vector<8x256xf32>
    %cst_13 = arith.constant 0.000000e+00 : f32
    %38 = vector.broadcast %cst_13 : f32 to vector<8x256xf32>
    %39 = arith.maximumf %37, %38 : vector<8x256xf32>
    %c0_14 = arith.constant 0 : index
    %c0_15 = arith.constant 0 : index
    %c0_16 = arith.constant 0 : index
    %40 = vector.load %arg4[%c0_14, %c0_15, %c0_16] : memref<1x8x256xf32, #tpu.memory_space<vmem>>, vector<1x8x256xf32>
    %41 = vector.shape_cast %40 : vector<1x8x256xf32> to vector<8x256xf32>
    %42 = vector.shape_cast %39 : vector<8x256xf32> to vector<1x8x256xf32>
    tpu.vector_store %arg4[%c0_14, %c0_15, %c0_16], %42 {strides = array<i32>} : memref<1x8x256xf32, #tpu.memory_space<vmem>>, vector<1x8x256xf32>,
    return
  }
  func.func @transform_0(%arg0: i32) -> (i32, i32) {
    %c0_i32 = arith.constant 0 : i32
    %c0_i32_0 = arith.constant 0 : i32
    %c0_i32_1 = arith.constant 0 : i32
    return %c0_i32, %c0_i32_0 : i32, i32
  }
  func.func @transform_1(%arg0: i32) -> (i32, i32, i32) {
    %c0_i32 = arith.constant 0 : i32
    %c0_i32_0 = arith.constant 0 : i32
    %c0_i32_1 = arith.constant 0 : i32
    return %arg0, %c0_i32, %c0_i32_0 : i32, i32, i32
  }
  func.func @transform_2(%arg0: i32) -> (i32, i32) {
    %c0_i32 = arith.constant 0 : i32
    %c0_i32_0 = arith.constant 0 : i32
    %c0_i32_1 = arith.constant 0 : i32
    return %c0_i32, %c0_i32_0 : i32, i32
  }
  func.func @transform_3(%arg0: i32) -> (i32, i32, i32) {
    %c0_i32 = arith.constant 0 : i32
    %c0_i32_0 = arith.constant 0 : i32
    %c0_i32_1 = arith.constant 0 : i32
    return %arg0, %c0_i32, %c0_i32_0 : i32, i32, i32
  }
}

</mosaic_0001>

<bundles_post_ra>
// kernel: tpu_custom_call.1
= control target key start
LH: loop header
LB: loop body
LE: loop exit
PB: predicated region body
PF: predicated region fallthrough
CT: control target
= control target key end

     0   :  { %8 = vsyncpa [#allocation3], 0  ;;  %s1104_s0 = inlined_call_operand.hbm [shape: f32[9,256], index: 0, kind: input, shape index: {}]   ;;  %s1105_s1 = inlined_call_operand.hbm [shape: f32[2,4,256], index: 1, kind: input, shape index: {}]   ;;  %s1106_s2 = inlined_call_operand.vmem [shape: bf16[8,36], index: 2, kind: input, shape index: {}]   ;;  %s1107_s3 = inlined_call_operand.hbm [shape: f32[2,8,256], index: 3, kind: output, shape index: {}]  }
   0x1   :  { %9 = vsyncpa [#allocation6], 0 }
   0x2   :  { %11 = vsyncpa [#allocation6 + $0x1], 0 }
   0x3   :  { %12 = vsyncpa [#allocation4], 0 }
   0x4   :  { %14 = vsyncpa [#allocation4 + $0x1], 0  ;;  %s830_s12 = smov 0   ;;  %s832_s13 = smov 0  }
   0x5   :  { %s834_s14 = smov 0   ;;  %s836_s15 = smov 0  }
   0x6 LB: > { %s851_s16 = sadd.s32 4294967295, %s794_s15   ;;  %s577_s17 = sadd.s32 4294967294, %s794_s15   ;;  %s794_s15 = sphi %s836_s15, %s1127_s15   ;;  %s790_s14 = sphi %s834_s14, %s1126_s14   ;;  %s786_s13 = sphi %s832_s13, %s1125_s13   ;;  %s782_s12 = sphi %s830_s12, %s1124_s12  }
   0x7   : > { %p61_p0 = scmp.ne.s32.totalorder %s786_s13, %s782_s12  ;;  %p1108_p1 = scmp.eq.s32.totalorder %s851_s16, 0 }
   0x8   : > { %p112_p3 = scmp.eq.s32.totalorder %s577_s17, 1  ;;  %p578_p5 = scmp.ge.s32.totalorder %s794_s15, 1 }
   0x9   : > { %p860_p4 = por %p1108_p1, %p61_p0  ;;  %p119_p7 = scmp.lt.s32.totalorder %s794_s15, 3 }
   0xa   : > { %p865_p6 = por %p112_p3, %p61_p0  ;;  %s796_s21 = smov [#allocation2]  }
   0xb   : > { %s1111_s18 = scalar_select %p860_p4, 1, 0 }
   0xc   : > { %s1112_s19 = scalar_select %p865_p6, 1, 0 }
   0xd   : > { %p870_p8 = pnand %p578_p5, %p119_p7  ;;  %s131_s22 = sshll.u32 %s796_s21, 4  ;;  %s874_s22 = int_to_ptr.vmem [resolvable:$true] %s131_s22 }
   0xe   : > { %s886_s24 = sadd.s32 1, %s794_s15   ;;  %s48_s25 = sadd.s32 1, %s790_s14 }
   0xf   : > { %s1113_s20 = scalar_select %p870_p8, 1, 0 }
  0x10   : > { %p605_p9 = pneg %p870_p8  ;;  %s45_s26 = ssub.s32 %s794_s15, %s886_s24 }
  0x11   : > { %s666_s29 = scalar_lea.hbm %s1104_s0, 512 }
  0x12   : > { %p881_p11 = pnand %p605_p9, %p1108_p1  ;;  %p667_p12 = scmp.ne.s32.totalorder %s1104_s0, %s666_s29 }
  0x13   : > { %p673_p5 = scmp.lt.u32.totalorder %s666_s29, %s1104_s0 }
  0x14   : > { %p668_p13 = pneg %p881_p11 }
  0x16   : > { %p669_p0 = pnand %p668_p13, %p667_p12 }
  0x18   : > { %p670_p3 = pneg %p669_p0 }
  0x1a   : > { %p675_p7 = pnand %p673_p5, %p670_p3 }
  0x1c   : > { %678 = shalt.err (!%p675_p7)
}
  0x1d   : > { %s679_s7 = scalar_lea.vmem %s874_s22, 512  ;;  %p687_p2 = scmp.lt.s32.totalorder %s874_s22, %s874_s22 }
  0x1e   : > { %p680_p9 = scmp.ne.s32.totalorder %s874_s22, %s679_s7  ;;  %p688_p6 = scmp.lt.s32.totalorder %s679_s7, %s679_s7 }
  0x20   : > { %p682_p10 = pnand %p680_p9, %p668_p13  ;;  %p689_p4 = por %p688_p6, %p687_p2 }
  0x22   : > { %p683_p1 = pneg %p682_p10 }
  0x24   : > { %p690_p8 = pnand %p689_p4, %p683_p1 }
  0x26   : > { %693 = shalt.err (!%p690_p8)
}
  0x27   : > { %s797_s8 = smov 256   ;;  %s798_s9 = smov 16  }
  0x28   : > { %608 = dma.hbm_to_vmem [thread:$0]  (!%p881_p11), %s1104_s0, 512, %s874_s22, [#allocation3], %s797_s8, %s797_s8, %s798_s9  }
  0x29   : > { %p46_p2 = scmp.eq.s32.totalorder %s45_s26, 0  ;;  %p55_p1 = scmp.ne.s32.totalorder %s790_s14, %s786_s13 }
  0x2a   : > { %p56_p4 = scmp.eq.s32.totalorder %s794_s15, 0  ;;  %p618_p6 = scmp.lt.s32.totalorder %s794_s15, 2 }
  0x2b   : > { %s917_s17 = scalar_select %p46_p2, %s790_s14, %s48_s25  }
  0x2c   : > { %p57_p8 = por %p56_p4, %p55_p1  ;;  %p1115_p10 = scmp.eq.s32.totalorder %s851_s16, 1 }
  0x2d   : > { %s148_s27 = sand.u32 1, %s790_s14   ;;  %s595_s28 = sshll.u32 %s794_s15, 7 }
  0x2e   : > { %p921_p12 = por %p1115_p10, %p55_p1  ;;  %s581_s29 = sshll.u32 %s148_s27, 3 }
  0x2f   : > { %s930_s4 = scalar_lea.hbm %s1105_s1, %s595_s28  ;;  %s152_s22 = scalar_lea.vmem [#allocation5], %s581_s29 }
  0x30   : > { %s160_s25 = sshll.u32 %s152_s22, 4  ;;  %p932_p11 = pnand %p618_p6, %p57_p8  ;;  %s936_s25 = int_to_ptr.vmem [resolvable:$true] %s160_s25 }
  0x31   : > { %s149_s5 = scalar_lea.sflag [#allocation6], %s148_s27  ;;  %s694_s6 = scalar_lea.hbm %s930_s4, 128 }
  0x32   : > { %p695_p13 = scmp.ne.s32.totalorder %s930_s4, %s694_s6  ;;  %p696_p0 = pneg %p932_p11 }
  0x33   : > { %s699_s9 = scalar_lea.hbm %s1105_s1, 256  ;;  %p700_p7 = scmp.lt.u32.totalorder %s930_s4, %s1105_s1 }
  0x34   : > { %p697_p3 = pnand %p696_p0, %p695_p13  ;;  %p701_p9 = scmp.lt.u32.totalorder %s699_s9, %s694_s6 }
  0x35   : > { %p703_p1 = scmp.lt.u32.totalorder %s694_s6, %s930_s4 }
  0x36   : > { %p698_p5 = pneg %p697_p3  ;;  %p702_p2 = por %p701_p9, %p700_p7 }
  0x38   : > { %p704_p4 = por %p703_p1, %p702_p2 }
  0x3a   : > { %p705_p6 = pnand %p704_p4, %p698_p5 }
  0x3c   : > { %708 = shalt.err (!%p705_p6)
}
  0x3d   : > { %s709_s27 = scalar_lea.vmem %s936_s25, 128  ;;  %s799_s28 = smov [#allocation5]  }
  0x3e   : > { %p710_p8 = scmp.ne.s32.totalorder %s936_s25, %s709_s27  ;;  %s714_s29 = sshll.u32 %s799_s28, 4  ;;  %s715_s29 = int_to_ptr.vmem [resolvable:$false] %s714_s29 }
  0x3f   : > { %s716_s23 = scalar_lea.vmem %s715_s29, 256  ;;  %p717_p3 = scmp.lt.s32.totalorder %s936_s25, %s715_s29 }
  0x40   : > { %p712_p10 = pnand %p710_p8, %p696_p0  ;;  %p718_p7 = scmp.lt.s32.totalorder %s716_s23, %s709_s27 }
  0x42   : > { %p713_p13 = pneg %p712_p10  ;;  %p719_p9 = por %p718_p7, %p717_p3 }
  0x44   : > { %p720_p2 = pnand %p719_p9, %p713_p13 }
  0x46   : > { %723 = shalt.err (!%p720_p2)
}
  0x47   : > { %612 = dma.hbm_to_vmem [thread:$0]  (!%p932_p11), %s930_s4, 128, %s936_s25, %s149_s5  }
  0x48   : > { %p1118_p5 = scmp.ne.s32.totalorder %s1113_s20, 0 }
  0x49   : > { %p1119_p0 = scmp.eq.s32.totalorder (!%p1118_p5), %s851_s16, 0 }
  0x4a   : > { %169 = sbr.rel (%p1118_p5) target bundleno = 469 (0x1d5), region = 32 }
  0x51   : > { %769 = dma.done.wait (%p1119_p0), [#allocation3], 512   ;;  %p1120_p1 = pmov %p1119_p0 }
  0x52   : > { %s970_s30 = sand.u32 1, %s786_s13   ;;  %p1121_p4 = scmp.ne.s32.totalorder %s1111_s18, 0 }
  0x53   : > { %771 = vsyncadd (%p1120_p1), [#allocation3], 4294966784  ;;  %s586_s22 = sshll.u32 %s970_s30, 3  ;;  %s176_s26 = scalar_lea.sflag [#allocation6], %s970_s30 }
  0x54   : > { %s179_s6 = scalar_lea.vmem [#allocation5], %s586_s22 }
  0x55   : > { %773 = dma.done.wait (%p1121_p4), %s176_s26, 128  }
  0x56   : > { %775 = vsyncadd (%p1121_p4), %s176_s26, 4294967168  ;;  %v978_v0 = vld [vmem:[%s179_s6] sm:$0xff]  ;;  %s800_s20 = smov 1   ;;  %s801_s4 = smov 16   ;;  %v806_v2 = vmov 0   ;;  %v211_v3 = vlaneseq  ;;  %vm408_vm4 = vcmask 1043456  }
  0x57   : > { %274 = vrot.lane.b32.xlu1 %v978_v0, %s800_s20  ;;  %230 = vrot.lane.b32.xlu0 %v978_v0, %s801_s4  ;;  %v984_v1 = vcombine.high %v978_v0, %v978_v0  ;;  %s802_s25 = smov 17   ;;  %s803_s18 = smov 15   ;;  %v282_v10 = vld [vmem:[#allocation2 + $0x3] ss:$8 sm:$0x3]  ;;  %vm428_vm9 = vcmask 1041408  }
  0x58   : > { %s804_s5 = smov 127   ;;  %s805_s7 = smov 112   ;;  %467 = vmatprep.mubr.bf16.mxu0 %v806_v2  ;;  %v219_v4 = vshrl.u32 %v211_v3, 7  ;;  %v1000_v5 = vand.u32 127, %v211_v3  ;;  %vm424_vm10 = vcmask 293888  }
  0x59   : > { %s807_s8 = smov 113   ;;  %s808_s9 = smov 111   ;;  %v238_v11 = vld [vmem:[#allocation2 + $0x1] ss:$8 sm:$0x3] }
  0x5a   : > { %v1002_v8 = vsub.s32 0, %v219_v4  ;;  %v1004_v9 = vsub.s32 1, %v219_v4  ;;  %vm278_vm0 = vcmp.lt.s32.totalorder %v1000_v5, 1  ;;  %v216_v16 = vld [vmem:[#allocation2] ss:$8 sm:$0x3] }
  0x5b   : > { %207 = vrot.lane.b32.xlu0 %v978_v0, %s802_s25  ;;  %276 = vrot.lane.b32.xlu1 %v984_v1, %s800_s20  ;;  %vm234_vm1 = vcmp.lt.s32.totalorder %v1000_v5, 16  ;;  %v260_v21 = vld [vmem:[#allocation2 + $0x2] ss:$8 sm:$0x3]  ;;  %vm213_vm2 = vcmp.lt.s32.totalorder %v1000_v5, 17  ;;  %vm256_vm3 = vcmp.lt.s32.totalorder %v1000_v5, 15 }
  0x5c   : > { %v287_v14 = vrot.slane %v282_v10, %v1002_v8  ;;  %v291_v15 = vrot.slane %v282_v10, %v1004_v9  ;;  %v243_v19 = vrot.slane %v238_v11, %v1002_v8  ;;  %v247_v20 = vrot.slane %v238_v11, %v1004_v9  ;;  %v304_v40 = vld [vmem:[#allocation2 + $0x5] ss:$8 sm:$0x3]  ;;  %v348_v51 = vld [vmem:[#allocation2 + $0x7] ss:$8 sm:$0x3] }
  0x5d   : > { %v221_v22 = vrot.slane %v216_v16, %v1002_v8  ;;  %v225_v23 = vrot.slane %v216_v16, %v1004_v9  ;;  %v265_v32 = vrot.slane %v260_v21, %v1002_v8  ;;  %v269_v33 = vrot.slane %v260_v21, %v1004_v9  ;;  %v326_v2 = vld [vmem:[#allocation2 + $0x6] ss:$8 sm:$0x3]  ;;  %v370_v16 = vld [vmem:[#allocation2 + $0x10] ss:$8 sm:$0x3] }
  0x5e   : > { %vm300_vm5 = vcmp.lt.s32.totalorder %v1000_v5, 127  ;;  %v309_v49 = vrot.slane %v304_v40, %v1002_v8  ;;  %v313_v50 = vrot.slane %v304_v40, %v1004_v9  ;;  %vm344_vm6 = vcmp.lt.s32.totalorder %v1000_v5, 112  ;;  %v423_v40 = vld [vmem:[%s1106_s2] sm:$0xf]  ;;  %s587_s27 = sshll.u32 %s970_s30, 4  ;;  %s596_s28 = sshll.u32 %s851_s16, 8 }
  0x5f   : > { %209 = vrot.lane.b32.xlu1 %v984_v1, %s802_s25  ;;  %232 = vrot.lane.b32.xlu0 %v984_v1, %s801_s4  ;;  %v353_v62 = vrot.slane %v348_v51, %v1002_v8  ;;  %v357_v63 = vrot.slane %v348_v51, %v1004_v9  ;;  %vm322_vm7 = vcmp.lt.s32.totalorder %v1000_v5, 113  ;;  %vm366_vm8 = vcmp.lt.s32.totalorder %v1000_v5, 111  ;;  %s201_s29 = scalar_lea.vmem [#allocation7], %s587_s27  ;;  %s1060_s6 = scalar_lea.hbm %s1107_s3, %s596_s28 }
  0x60   : > { %s495_s23 = sshll.u32 %s201_s29, 4  ;;  %s481_s16 = scalar_lea.sflag [#allocation4], %s970_s30  ;;  %s1062_s23 = int_to_ptr.vmem [resolvable:$true] %s495_s23 }
  0x61   : > { %s724_s20 = scalar_lea.vmem %s1062_s23, 256  ;;  %s809_s4 = smov [#allocation7]  }
  0x62   : > { %p725_p11 = scmp.ne.s32.totalorder %s1062_s23, %s724_s20  ;;  %s728_s25 = sshll.u32 %s809_s4, 4  ;;  %s729_s25 = int_to_ptr.vmem [resolvable:$false] %s728_s25 }
  0x63   : > { %254 = vrot.lane.b32.xlu1 %v984_v1, %s803_s18  ;;  %252 = vrot.lane.b32.xlu0 %v978_v0, %s803_s18  ;;  %s730_s18 = scalar_lea.vmem %s729_s25, 512  ;;  %p731_p10 = scmp.lt.s32.totalorder %s1062_s23, %s729_s25 }
  0x64   : > { %p726_p6 = pnand %p725_p11, %p921_p12  ;;  %p732_p13 = scmp.lt.s32.totalorder %s730_s18, %s724_s20 }
  0x66   : > { %p727_p8 = pneg %p726_p6  ;;  %p733_p3 = por %p732_p13, %p731_p10 }
  0x67   : > { %298 = vrot.lane.b32.xlu1 %v984_v1, %s804_s5  ;;  %296 = vrot.lane.b32.xlu0 %v978_v0, %s804_s5 }
  0x68   : > { %p734_p7 = pnand %p733_p3, %p727_p8 }
  0x6b   : > { %342 = vrot.lane.b32.xlu1 %v984_v1, %s805_s7  ;;  %340 = vrot.lane.b32.xlu0 %v978_v0, %s805_s7 }
  0x6f   : > { %320 = vrot.lane.b32.xlu1 %v984_v1, %s807_s8  ;;  %318 = vrot.lane.b32.xlu0 %v978_v0, %s807_s8 }
  0x73   : > { %364 = vrot.lane.b32.xlu1 %v984_v1, %s808_s9  ;;  %362 = vrot.lane.b32.xlu0 %v978_v0, %s808_s9 }
  0xc9   : > { %v275_v6 = vpop.permute.xlu1 %274  ;;  %v231_v7 = vpop.permute.xlu0 %230 }
  0xcd   : > { %v208_v12 = vpop.permute.xlu0 %207  ;;  %v277_v13 = vpop.permute.xlu1 %276 }
  0xce   : > { %v279_v17 = vsel %vm278_vm0, %v275_v6, %v277_v13  ;;  %v280_v18 = vsel %vm278_vm0, %v277_v13, %v275_v6 }
  0xcf   : > { %v294_v26 = vmul.f32 %v287_v14, %v280_v18  ;;  %v295_v27 = vmul.f32 %v291_v15, %v279_v17  ;;  %v331_v14 = vrot.slane %v326_v2, %v1002_v8  ;;  %v335_v15 = vrot.slane %v326_v2, %v1004_v9 }
  0xd1   : > { %v210_v24 = vpop.permute.xlu1 %209  ;;  %v233_v25 = vpop.permute.xlu0 %232  ;;  %v392_v41 = vrot.slane %v294_v26, 4  ;;  %v393_v42 = vrot.slane %v295_v27, 4 }
  0xd2   : > { %v235_v28 = vsel %vm234_vm1, %v231_v7, %v233_v25  ;;  %v236_v29 = vsel %vm234_vm1, %v233_v25, %v231_v7  ;;  %v214_v34 = vsel %vm213_vm2, %v208_v12, %v210_v24  ;;  %v215_v35 = vsel %vm213_vm2, %v210_v24, %v208_v12 }
  0xd3   : > { %v250_v30 = vmul.f32 %v243_v19, %v236_v29  ;;  %v251_v31 = vmul.f32 %v247_v20, %v235_v28  ;;  %v228_v45 = vmul.f32 %v221_v22, %v215_v35  ;;  %v229_v46 = vmul.f32 %v225_v23, %v214_v34 }
  0xd4   : > { %v375_v23 = vrot.slane %v370_v16, %v1002_v8  ;;  %v379_v24 = vrot.slane %v370_v16, %v1004_v9 }
  0xd5   : > { %v386_v36 = vrot.slane %v250_v30, 4  ;;  %v387_v37 = vrot.slane %v251_v31, 4  ;;  %v255_v38 = vpop.permute.xlu1 %254  ;;  %v253_v39 = vpop.permute.xlu0 %252 }
  0xd6   : > { %v257_v43 = vsel %vm256_vm3, %v253_v39, %v255_v38  ;;  %v258_v44 = vsel %vm256_vm3, %v255_v38, %v253_v39 }
  0xd7   : > { %v272_v47 = vmul.f32 %v265_v32, %v258_v44  ;;  %v273_v48 = vmul.f32 %v269_v33, %v257_v43  ;;  %v410_v54 = vsel %vm408_vm4, %v229_v46, %v387_v37  ;;  %v409_v56 = vsel %vm408_vm4, %v228_v45, %v386_v36 }
  0xd9   : > { %v299_v52 = vpop.permute.xlu1 %298  ;;  %v297_v53 = vpop.permute.xlu0 %296  ;;  %v412_v55 = vsel %vm408_vm4, %v273_v48, %v393_v42  ;;  %v411_v57 = vsel %vm408_vm4, %v272_v47, %v392_v41 }
  0xda   : > { %v301_v58 = vsel %vm300_vm5, %v297_v53, %v299_v52  ;;  %v302_v59 = vsel %vm300_vm5, %v299_v52, %v297_v53  ;;  %v418_v60 = vpack.c.bf16 %v412_v55, %v410_v54  ;;  %v417_v61 = vpack.c.bf16 %v411_v57, %v409_v56 }
  0xdb   : > { %v316_v3 = vmul.f32 %v309_v49, %v301_v58  ;;  %v317_v4 = vmul.f32 %v313_v50, %v302_v59 }
  0xdc   : > { %435 = vmatprep.subr.bf16.mxu0 %v418_v60 }
  0xdd   : > { %v343_v6 = vpop.permute.xlu1 %342  ;;  %436 = vmatpush1.bf16.msra.mxu0 %v417_v61  ;;  %v341_v7 = vpop.permute.xlu0 %340  ;;  %v398_v17 = vrot.slane %v316_v3, 4  ;;  %v399_v18 = vrot.slane %v317_v4, 4 }
  0xde   : > { %v345_v10 = vsel %vm344_vm6, %v341_v7, %v343_v6  ;;  %v346_v11 = vsel %vm344_vm6, %v343_v6, %v341_v7 }
  0xdf   : > { %v360_v12 = vmul.f32 %v353_v62, %v345_v10  ;;  %v361_v13 = vmul.f32 %v357_v63, %v346_v11  ;;  %v414_v31 = vsel %vm408_vm4, %v984_v1, %v399_v18  ;;  %v413_v33 = vsel %vm408_vm4, %v978_v0, %v398_v17 }
  0xe1   : > { %v321_v19 = vpop.permute.xlu1 %320  ;;  %v319_v20 = vpop.permute.xlu0 %318  ;;  %v404_v25 = vrot.slane %v360_v12, 4  ;;  %v405_v26 = vrot.slane %v361_v13, 4 }
  0xe2   : > { %v323_v21 = vsel %vm322_vm7, %v319_v20, %v321_v19  ;;  %v324_v22 = vsel %vm322_vm7, %v321_v19, %v319_v20 }
  0xe3   : > { %v338_v27 = vmul.f32 %v331_v14, %v323_v21  ;;  %v339_v28 = vmul.f32 %v335_v15, %v324_v22 }
  0xe5   : > { %v365_v29 = vpop.permute.xlu1 %364  ;;  %v363_v30 = vpop.permute.xlu0 %362  ;;  %v416_v32 = vsel %vm408_vm4, %v339_v28, %v405_v26  ;;  %v415_v34 = vsel %vm408_vm4, %v338_v27, %v404_v25 }
  0xe6   : > { %v367_v8 = vsel %vm366_vm8, %v363_v30, %v365_v29  ;;  %v368_v9 = vsel %vm366_vm8, %v365_v29, %v363_v30  ;;  %v420_v35 = vpack.c.bf16 %v416_v32, %v414_v31  ;;  %v419_v36 = vpack.c.bf16 %v415_v34, %v413_v33 }
  0xe7   : > { %v382_v37 = vmul.f32 %v375_v23, %v367_v8  ;;  %v383_v38 = vmul.f32 %v379_v24, %v368_v9 }
  0xe8   : > { %437 = vmatprep.subr.bf16.mxu0 %v420_v35 }
  0xe9   : > { %v421_v1 = vpack.c.bf16 %v382_v37, %v382_v37  ;;  %v422_v39 = vpack.c.bf16 %v383_v38, %v383_v38  ;;  %438 = vmatpush1.bf16.msra.mxu0 %v419_v36 }
  0xeb   : > { %588 = vmatprep.subr.msk.bf16.mxu0 %vm428_vm9, %v422_v39  ;;  %v430_v0 = vsel %vm428_vm9, %v421_v1, 0 }
  0xed   : > { %440 = vmatpush1.bf16.msra.mxu0 %v430_v0 }
  0xf0   : > { %589 = vmatmul.mubr.msk.bf16.vlgmr.msra.gmra.mrb[0].mxu0 %vm424_vm10, %v423_v40 }
 0x1c3   : > { %v469_v5 = vpop.f32.mrb[0].mxu0 }
 0x1c4   : > { %v476_v41 = vmax.f32 %v469_v5, 0.0  ;;  %v471_v42 = vpop.f32.mrb[1].mxu0 }
 0x1c5   : > { %v477_v43 = vmax.f32 %v471_v42, 0.0  ;;  %v473_v44 = vpop.f32.mrb[2].mxu0 }
 0x1c6   : > { %478 = vst [vmem:[%s201_s29] sm:$0xff] %v476_v41  ;;  %v474_v45 = vpop.f32.mrb[3].mxu0 }
 0x1c7   : > { %479 = vst [vmem:[%s201_s29 + $0x8] sm:$0xff] %v477_v43 }
 0x1c8   : > { %737 = shalt.err (!%p734_p7)
}
 0x1c9   : > { %s738_s30 = scalar_lea.hbm %s1060_s6, 256  ;;  %s742_s8 = scalar_lea.hbm %s1107_s3, 512 }
 0x1ca   : > { %p739_p9 = scmp.ne.s32.totalorder %s1060_s6, %s738_s30  ;;  %p743_p0 = scmp.lt.u32.totalorder %s1060_s6, %s1107_s3 }
 0x1cb   : > { %p744_p1 = scmp.lt.u32.totalorder %s742_s8, %s738_s30  ;;  %p746_p11 = scmp.lt.u32.totalorder %s738_s30, %s1060_s6 }
 0x1cc   : > { %p740_p2 = pnand %p739_p9, %p921_p12 }
 0x1cd   : > { %p745_p4 = por %p744_p1, %p743_p0 }
 0x1ce   : > { %p741_p5 = pneg %p740_p2 }
 0x1cf   : > { %p747_p6 = por %p746_p11, %p745_p4 }
 0x1d1   : > { %p748_p8 = pnand %p747_p6, %p741_p5 }
 0x1d3   : > { %751 = shalt.err (!%p748_p8)
}
 0x1d4   : > { %603 = dma.vmem_to_hbm [thread:$0]  (%p921_p12), %s1062_s23, 256, %s1060_s6, %s481_s16  }
 0x1d5 PF: > { %s507_s11 = sand.u32 1, %s782_s12   ;;  %p1122_p10 = scmp.ne.s32.totalorder %s1112_s19, 0 }
 0x1d6   : > { %p1123_p13 = scmp.ge.s32.totalorder %s794_s15, 2  ;;  %s508_s27 = scalar_lea.sflag [#allocation4], %s507_s11 }
 0x1d8   : > { %p614_p3 = pnand %p1123_p13, %p1122_p10 }
 0x1da   : > { %777 = dma.done.wait (!%p614_p3), %s508_s27, 256  }
 0x1db   : > { %779 = vsyncadd (!%p614_p3), %s508_s27, 4294967040  ;;  %p17_p7 = scmp.ge.s32.totalorder %s886_s24, 4   ;;  %s1124_s12 = smov %s786_s13 }
 0x1dc   : > { %s1125_s13 = smov %s790_s14  ;;  %s1126_s14 = smov %s917_s17 }
 0x1dd   : > { %s1127_s15 = smov %s886_s24  ;;  %19 = sbr.rel (!%p17_p7) target bundleno = 6 (0x6), region = 89 }
 0x1e4   :  { %513 = vsyncpa [#allocation3], 1 }
 0x1e5   :  { %515 = vsyncpa [#allocation3 + $0x1], 1 }
 0x1e6   :  { %516 = vsyncpa [#allocation6], 1 }
 0x1e7   :  { %518 = vsyncpa [#allocation6 + $0x1], 1 }
 0x1e8   :  { %519 = vsyncpa [#allocation4], 1 }
 0x1e9   :  { %521 = vsyncpa [#allocation4 + $0x1], 1 }

</bundles_post_ra>
